<compile_context>
chip_gen: v5e
topology: v5e:2x2
jax: 0.10.0
libtpu: 0.0.40
codegen_flags: <defaults>
</compile_context>

<pallas_src>
import functools
import math

import jax
import jax.numpy as jnp
from jax.experimental import pallas as pl
from jax.experimental.pallas import tpu as pltpu


# -----------------------------------------------------------------------------
# Fused kernel: single [9B, tk] @ [tk, D] feature matmul per K tile
#               + DDKD head epilogue on the last K step.
# -----------------------------------------------------------------------------
def _ddkd_fused_kernel(x_ref, wf_ref, weight_ref, out_ref, acc_ref):
    k = pl.program_id(0)
    nk = pl.num_programs(0)

    # One fused feature matmul per K tile (bf16 MXU inputs, f32 accumulation).
    p = jnp.dot(x_ref[...], wf_ref[...], preferred_element_type=jnp.float32)

    @pl.when(k == 0)
    def _():
        acc_ref[...] = p          # write directly; no zero-init pass

    @pl.when(k > 0)
    def _():
        acc_ref[...] += p

    # ---- DDKD head epilogue, only on the final K step (feats stay in VMEM).
    @pl.when(k == nk - 1)
    def _():
        eps = jnp.float32(1e-8)
        feats = acc_ref[...]                               # [9B, D] f32
        n_h, n_class = weight_ref.shape                    # (6, n_class)
        rows = feats.shape[0]
        b = rows // (3 + n_h)                              # static batch

        # Row-wise inverse norms via EUP rsqrt; each norm clamped to >= eps.
        inv = jax.lax.rsqrt(
            jnp.maximum(jnp.sum(feats * feats, axis=-1, keepdims=True),
                        eps * eps))                        # [9B, 1]

        ft, fh = feats[: 3 * b], feats[3 * b:]             # [3B, D], [6B, D]
        inv_t, inv_h = inv[: 3 * b], inv[3 * b:]

        # Sum of the 3 normalized trait maps, built without a [3B, D] temp.
        t_sum = (ft[0:b] * inv_t[0:b]
                 + ft[b:2 * b] * inv_t[b:2 * b]
                 + ft[2 * b:3 * b] * inv_t[2 * b:3 * b])   # [B, D]

        # <histo_h[b], t_sum[b]> for all 6B rows in ONE D-wide reduce; the
        # full normalized [6B, D] temp is never materialized (divide after).
        t_rep = jnp.concatenate([t_sum] * n_h, axis=0)     # [6B, D]
        dots = jnp.sum(fh * t_rep, axis=-1, keepdims=True) * inv_h   # [6B, 1]

        scale = jnp.float32(1.0 / (3.0 * b))
        w = weight_ref[...].astype(jnp.float32)            # [6, n_class]
        res = jnp.zeros((1, n_class), jnp.float32)
        for h in range(n_h):                               # 6 tiny [B,1] means
            sim_h = jnp.sum(dots[h * b:(h + 1) * b]) * scale
            res = res + sim_h * w[h:h + 1, :]
        out_ref[...] = res.astype(out_ref.dtype)


# -----------------------------------------------------------------------------
# Setup-time helpers (run ONCE, off the per-call path).
# -----------------------------------------------------------------------------
def _physical_vmem_bytes():
    """Best-effort physical VMEM query (v5e/v6e: 128 MiB, v7x: 64 MiB/TC)."""
    try:
        info = pltpu.get_tpu_info()
        for attr in ("vmem_capacity_bytes", "vmem_bytes", "vmem_size_bytes"):
            v = getattr(info, attr, None)
            if v:
                return int(v)
    except Exception:
        pass
    return 64 * 1024 * 1024  # conservative fallback (safe for v7x per-TC)


def _choose_tile_k(feat_in, d_p, rows, vmem_limit_bytes):
    """Largest 128-multiple K tile whose working set fits the VMEM budget."""
    # Target the double-buffered bf16 W tile at ~55% of the scoped limit.
    w_budget = int(vmem_limit_bytes * 0.55)
    tk = max(128, (w_budget // (2 * 2 * d_p)) // 128 * 128)
    tk = min(tk, pl.cdiv(feat_in, 128) * 128)   # never wider than padded K dim
    while tk > 128:
        need = (2 * (2 * tk * d_p)              # W double buffer (bf16)
                + 2 * (2 * rows * tk)           # x double buffer (bf16)
                + 4 * rows * d_p                # f32 feature accumulator
                + (2 << 20))                    # headroom (weight/out/scratch)
        if need <= vmem_limit_bytes:
            break
        tk -= 128
    return tk


def prepare_ddkd_backbone(w_feat, batch, n_traits=3, n_histos=6,
                          vmem_limit_bytes=None):
    """Pad + cast the frozen backbone weight ONCE (hoisted off the call path).

    Returns (wf_bf16 [f_p, d_p], tk, vmem_limit_bytes).  Zero padding of the
    contraction / feature dims does not change matmuls, norms or dot products.
    """
    feat_in, d = w_feat.shape
    d_p = pl.cdiv(d, 128) * 128
    rows = (n_traits + n_histos) * batch
    if vmem_limit_bytes is None:
        vmem_limit_bytes = max(32 * 1024 * 1024,
                               min(100 * 1024 * 1024,
                                   int(_physical_vmem_bytes() * 0.70)))
    tk = _choose_tile_k(feat_in, d_p, rows, vmem_limit_bytes)
    f_p = pl.cdiv(feat_in, tk) * tk
    if f_p != feat_in or d_p != d:
        w_feat = jnp.pad(w_feat, ((0, f_p - feat_in), (0, d_p - d)))
    return w_feat.astype(jnp.bfloat16), tk, vmem_limit_bytes


# -----------------------------------------------------------------------------
# Full DDKD forward (per-call path; W is already prepared).
# -----------------------------------------------------------------------------
@functools.partial(jax.jit, static_argnames=("tk", "vmem_limit_bytes"))
def ddkd_forward(imgs, histos_img, wf, weight, *, tk, vmem_limit_bytes):
    # imgs:       [3, B, C, H, W]   histos_img: [6, B, C, H, W]
    # wf:         [f_p, d_p] bf16 (from prepare_ddkd_backbone)
    # weight:     [6, n_class]
    n_t, b, c, h, w = imgs.shape
    n_hi = histos_img.shape[0]
    feat_in = c * h * w
    f_p, d_p = wf.shape
    n_class = weight.shape[1]
    rows = (n_t + n_hi) * b
    assert f_p % tk == 0 and f_p >= feat_in

    # Flatten + stack the 9 image stacks into one [9B, K] slab (tiny vs W),
    # so the kernel does a single matmul per K tile.
    x = jnp.concatenate(
        [imgs.reshape(n_t * b, feat_in), histos_img.reshape(n_hi * b, feat_in)],
        axis=0)
    if f_p != feat_in:
        x = jnp.pad(x, ((0, 0), (0, f_p - feat_in)))
    x = x.astype(jnp.bfloat16)
    weight = weight.astype(jnp.float32)

    kt = f_p // tk
    cost = pl.CostEstimate(
        flops=int(2 * rows * f_p * d_p),
        transcendentals=int(rows),
        bytes_accessed=int(x.size * 2 + wf.size * 2 + weight.size * 4
                           + 4 * n_class),
    )

    return pl.pallas_call(
        _ddkd_fused_kernel,
        out_shape=jax.ShapeDtypeStruct((1, n_class), jnp.float32),
        grid_spec=pltpu.PrefetchScalarGridSpec(
            num_scalar_prefetch=0,
            grid=(kt,),
            in_specs=[
                pl.BlockSpec((rows, tk), lambda k: (0, k)),       # all 9B rows
                pl.BlockSpec((tk, d_p), lambda k: (k, 0)),        # streamed W
                pl.BlockSpec((n_hi, n_class), lambda k: (0, 0)),  # head weight
            ],
            out_specs=pl.BlockSpec((1, n_class), lambda k: (0, 0)),
            scratch_shapes=[
                pltpu.VMEM((rows, d_p), jnp.float32),             # [9B, D] acc
            ],
        ),
        compiler_params=pltpu.CompilerParams(
            dimension_semantics=("arbitrary",),   # K is a reduction axis
            vmem_limit_bytes=vmem_limit_bytes,
        ),
        cost_estimate=cost,
    )(x, wf, weight)


if __name__ == "__main__":
    key = jax.random.PRNGKey(0)

    # Small shapes consistent with the module's forward.
    B, C, H, W = 2, 3, 16, 16
    D = 128           # proxy feature dim
    HISTO_NUM = 6     # fixed by the forward (6 histo inputs, 3 trait inputs)
    N_CLASS = 4

    k_img, k_histo, k_feat, k_w = jax.random.split(key, 4)
    imgs = jax.random.normal(k_img, (3, B, C, H, W), jnp.float32)
    histos_img = jax.random.normal(k_histo, (6, B, C, H, W), jnp.float32)

    # Deterministic proxy feature-extractor weights.
    # TODO(synk): stands in for the frozen RetCCL ResNet50 checkpoint.
    w_feat = jax.random.normal(k_feat, (C * H * W, D), jnp.float32) * 0.02

    # self.weight: kaiming_uniform_(mode='fan_in', nonlinearity='relu')
    fan_in = N_CLASS
    gain = math.sqrt(2.0)
    bound = math.sqrt(3.0) * gain / math.sqrt(float(fan_in))
    weight = jax.random.uniform(
        k_w, (HISTO_NUM, N_CLASS), jnp.float32, minval=-bound, maxval=bound
    )

    # One-time backbone-weight preparation (pad + bf16 cast + tiling choice).
    wf_prepared, tk, vmem_limit = prepare_ddkd_backbone(w_feat, batch=B)

    result = ddkd_forward(imgs, histos_img, wf_prepared, weight,
                          tk=tk, vmem_limit_bytes=vmem_limit)
    jax.block_until_ready(result)
    assert result.shape == (1, N_CLASS)
    print("KERNEL_OK")
</pallas_src>

<mosaic_0001>
module attributes {stable_mosaic.version = 11 : i64} {
  func.func @_ddkd_fused_kernel(%arg0: i32, %arg1: memref<18x768xbf16, #tpu.memory_space<vmem>>, %arg2: memref<768x128xbf16, #tpu.memory_space<vmem>>, %arg3: memref<6x4xf32, #tpu.memory_space<vmem>>, %arg4: memref<1x4xf32, #tpu.memory_space<vmem>>, %arg5: memref<18x128xf32, #tpu.memory_space<vmem>>) attributes {dimension_semantics = [#tpu.dimension_semantics<arbitrary>], iteration_bounds = array<i64: 1>, scalar_prefetch = 0 : i64, scratch_operands = 1 : i64, tpu.core_type = #tpu.core_type<tc>, window_params = [{transform_indices = @transform_0, window_bounds = array<i64: 18, 768>}, {transform_indices = @transform_1, window_bounds = array<i64: 768, 128>}, {pipeline_mode = #tpu.pipeline_mode<synchronous>, transform_indices = @transform_2, window_bounds = array<i64: 6, 4>}, {pipeline_mode = #tpu.pipeline_mode<synchronous>, transform_indices = @transform_3, window_bounds = array<i64: 1, 4>}]} {
    %c0 = arith.constant 0 : index
    %c0_0 = arith.constant 0 : index
    %0 = vector.load %arg1[%c0, %c0_0] : memref<18x768xbf16, #tpu.memory_space<vmem>>, vector<18x768xbf16>
    %c0_1 = arith.constant 0 : index
    %c0_2 = arith.constant 0 : index
    %1 = vector.load %arg2[%c0_1, %c0_2] : memref<768x128xbf16, #tpu.memory_space<vmem>>, vector<768x128xbf16>
    %cst = arith.constant dense<0.000000e+00> : vector<18x128xf32>
    %2 = tpu.matmul %0, %1, %cst {dimension_numbers = #tpu.dot_dimension_numbers<[1], [0], [0], [1], [0, 0, 1, 1], [], []>} : vector<18x768xbf16>, vector<768x128xbf16>, vector<18x128xf32> -> vector<18x128xf32>
    %c0_i32 = arith.constant 0 : i32
    %3 = arith.cmpi eq, %arg0, %c0_i32 : i32
    %4 = arith.extui %3 : i1 to i32
    %c0_i32_3 = arith.constant 0 : i32
    %5 = arith.cmpi ne, %4, %c0_i32_3 : i32
    scf.if %5 {
      %c0_8 = arith.constant 0 : index
      %c0_9 = arith.constant 0 : index
      %12 = vector.load %arg5[%c0_8, %c0_9] : memref<18x128xf32, #tpu.memory_space<vmem>>, vector<18x128xf32>
      tpu.vector_store %arg5[%c0_8, %c0_9], %2 {strides = array<i32>} : memref<18x128xf32, #tpu.memory_space<vmem>>, vector<18x128xf32>,
    } else {
    }
    %c0_i32_4 = arith.constant 0 : i32
    %6 = arith.cmpi sgt, %arg0, %c0_i32_4 : i32
    %7 = arith.extui %6 : i1 to i32
    %c0_i32_5 = arith.constant 0 : i32
    %8 = arith.cmpi ne, %7, %c0_i32_5 : i32
    scf.if %8 {
      %c0_8 = arith.constant 0 : index
      %c0_9 = arith.constant 0 : index
      %12 = vector.load %arg5[%c0_8, %c0_9] : memref<18x128xf32, #tpu.memory_space<vmem>>, vector<18x128xf32>
      %13 = arith.addf %12, %2 : vector<18x128xf32>
      %c0_10 = arith.constant 0 : index
      %c0_11 = arith.constant 0 : index
      %14 = vector.load %arg5[%c0_10, %c0_11] : memref<18x128xf32, #tpu.memory_space<vmem>>, vector<18x128xf32>
      tpu.vector_store %arg5[%c0_10, %c0_11], %13 {strides = array<i32>} : memref<18x128xf32, #tpu.memory_space<vmem>>, vector<18x128xf32>,
    } else {
    }
    %c0_i32_6 = arith.constant 0 : i32
    %9 = arith.cmpi eq, %arg0, %c0_i32_6 : i32
    %10 = arith.extui %9 : i1 to i32
    %c0_i32_7 = arith.constant 0 : i32
    %11 = arith.cmpi ne, %10, %c0_i32_7 : i32
    scf.if %11 {
      %c0_8 = arith.constant 0 : index
      %c0_9 = arith.constant 0 : index
      %12 = vector.load %arg5[%c0_8, %c0_9] : memref<18x128xf32, #tpu.memory_space<vmem>>, vector<18x128xf32>
      %13 = arith.mulf %12, %12 : vector<18x128xf32>
      %cst_10 = arith.constant dense<0.000000e+00> : vector<18xf32>
      %14 = vector.multi_reduction <add>, %13, %cst_10 [1] : vector<18x128xf32> to vector<18xf32>
      %15 = vector.shape_cast %14 : vector<18xf32> to vector<18x1xf32>
      %cst_11 = arith.constant 9.99999993E-9 : f32
      %cst_12 = arith.constant 9.99999993E-9 : f32
      %16 = arith.mulf %cst_11, %cst_12 : f32
      %17 = vector.broadcast %16 : f32 to vector<18x1xf32>
      %18 = arith.maximumf %15, %17 : vector<18x1xf32>
      %19 = math.rsqrt %18 : vector<18x1xf32>
      %20 = vector.extract_strided_slice %12 {offsets = [0, 0], sizes = [6, 128], strides = [1, 1]} : vector<18x128xf32> to vector<6x128xf32>
      %21 = vector.extract_strided_slice %12 {offsets = [6, 0], sizes = [12, 128], strides = [1, 1]} : vector<18x128xf32> to vector<12x128xf32>
      %22 = vector.extract_strided_slice %19 {offsets = [0, 0], sizes = [6, 1], strides = [1, 1]} : vector<18x1xf32> to vector<6x1xf32>
      %23 = vector.extract_strided_slice %19 {offsets = [6, 0], sizes = [12, 1], strides = [1, 1]} : vector<18x1xf32> to vector<12x1xf32>
      %24 = vector.extract_strided_slice %20 {offsets = [0, 0], sizes = [2, 128], strides = [1, 1]} : vector<6x128xf32> to vector<2x128xf32>
      %25 = vector.extract_strided_slice %22 {offsets = [0, 0], sizes = [2, 1], strides = [1, 1]} : vector<6x1xf32> to vector<2x1xf32>
      %26 = vector.broadcast %25 : vector<2x1xf32> to vector<2x128xf32>
      %27 = arith.mulf %24, %26 : vector<2x128xf32>
      %28 = vector.extract_strided_slice %20 {offsets = [2, 0], sizes = [2, 128], strides = [1, 1]} : vector<6x128xf32> to vector<2x128xf32>
      %29 = vector.extract_strided_slice %22 {offsets = [2, 0], sizes = [2, 1], strides = [1, 1]} : vector<6x1xf32> to vector<2x1xf32>
      %30 = vector.broadcast %29 : vector<2x1xf32> to vector<2x128xf32>
      %31 = arith.mulf %28, %30 : vector<2x128xf32>
      %32 = arith.addf %27, %31 : vector<2x128xf32>
      %33 = vector.extract_strided_slice %20 {offsets = [4, 0], sizes = [2, 128], strides = [1, 1]} : vector<6x128xf32> to vector<2x128xf32>
      %34 = vector.extract_strided_slice %22 {offsets = [4, 0], sizes = [2, 1], strides = [1, 1]} : vector<6x1xf32> to vector<2x1xf32>
      %35 = vector.broadcast %34 : vector<2x1xf32> to vector<2x128xf32>
      %36 = arith.mulf %33, %35 : vector<2x128xf32>
      %37 = arith.addf %32, %36 : vector<2x128xf32>
      %38 = tpu.concatenate %37, %37, %37, %37, %37, %37 in 0 : vector<2x128xf32>, vector<2x128xf32>, vector<2x128xf32>, vector<2x128xf32>, vector<2x128xf32>, vector<2x128xf32> -> vector<12x128xf32>
      %39 = arith.mulf %21, %38 : vector<12x128xf32>
      %cst_13 = arith.constant dense<0.000000e+00> : vector<12xf32>
      %40 = vector.multi_reduction <add>, %39, %cst_13 [1] : vector<12x128xf32> to vector<12xf32>
      %41 = vector.shape_cast %40 : vector<12xf32> to vector<12x1xf32>
      %42 = arith.mulf %41, %23 : vector<12x1xf32>
      %c0_14 = arith.constant 0 : index
      %c0_15 = arith.constant 0 : index
      %43 = vector.load %arg3[%c0_14, %c0_15] : memref<6x4xf32, #tpu.memory_space<vmem>>, vector<6x4xf32>
      %cst_16 = arith.constant 0.000000e+00 : f32
      %44 = vector.broadcast %cst_16 : f32 to vector<1x4xf32>
      %45 = vector.extract_strided_slice %42 {offsets = [0, 0], sizes = [2, 1], strides = [1, 1]} : vector<12x1xf32> to vector<2x1xf32>
      %46 = vector.shape_cast %45 : vector<2x1xf32> to vector<1x2x1xf32>
      %cst_17 = arith.constant dense<0.000000e+00> : vector<1xf32>
      %47 = vector.multi_reduction <add>, %46, %cst_17 [1, 2] : vector<1x2x1xf32> to vector<1xf32>
      %48 = vector.shape_cast %47 : vector<1xf32> to vector<1x1x1xf32>
      %49 = vector.extract %48[0, 0, 0] : f32 from vector<1x1x1xf32>
      %cst_18 = arith.constant 0.166666672 : f32
      %50 = arith.mulf %49, %cst_18 : f32
      %51 = vector.extract_strided_slice %43 {offsets = [0, 0], sizes = [1, 4], strides = [1, 1]} : vector<6x4xf32> to vector<1x4xf32>
      %52 = vector.broadcast %50 : f32 to vector<1x4xf32>
      %53 = arith.mulf %52, %51 : vector<1x4xf32>
      %54 = arith.addf %44, %53 : vector<1x4xf32>
      %55 = vector.extract_strided_slice %42 {offsets = [2, 0], sizes = [2, 1], strides = [1, 1]} : vector<12x1xf32> to vector<2x1xf32>
      %56 = vector.shape_cast %55 : vector<2x1xf32> to vector<1x2x1xf32>
      %cst_19 = arith.constant dense<0.000000e+00> : vector<1xf32>
      %57 = vector.multi_reduction <add>, %56, %cst_19 [1, 2] : vector<1x2x1xf32> to vector<1xf32>
      %58 = vector.shape_cast %57 : vector<1xf32> to vector<1x1x1xf32>
      %59 = vector.extract %58[0, 0, 0] : f32 from vector<1x1x1xf32>
      %cst_20 = arith.constant 0.166666672 : f32
      %60 = arith.mulf %59, %cst_20 : f32
      %61 = vector.extract_strided_slice %43 {offsets = [1, 0], sizes = [1, 4], strides = [1, 1]} : vector<6x4xf32> to vector<1x4xf32>
      %62 = vector.broadcast %60 : f32 to vector<1x4xf32>
      %63 = arith.mulf %62, %61 : vector<1x4xf32>
      %64 = arith.addf %54, %63 : vector<1x4xf32>
      %65 = vector.extract_strided_slice %42 {offsets = [4, 0], sizes = [2, 1], strides = [1, 1]} : vector<12x1xf32> to vector<2x1xf32>
      %66 = vector.shape_cast %65 : vector<2x1xf32> to vector<1x2x1xf32>
      %cst_21 = arith.constant dense<0.000000e+00> : vector<1xf32>
      %67 = vector.multi_reduction <add>, %66, %cst_21 [1, 2] : vector<1x2x1xf32> to vector<1xf32>
      %68 = vector.shape_cast %67 : vector<1xf32> to vector<1x1x1xf32>
      %69 = vector.extract %68[0, 0, 0] : f32 from vector<1x1x1xf32>
      %cst_22 = arith.constant 0.166666672 : f32
      %70 = arith.mulf %69, %cst_22 : f32
      %71 = vector.extract_strided_slice %43 {offsets = [2, 0], sizes = [1, 4], strides = [1, 1]} : vector<6x4xf32> to vector<1x4xf32>
      %72 = vector.broadcast %70 : f32 to vector<1x4xf32>
      %73 = arith.mulf %72, %71 : vector<1x4xf32>
      %74 = arith.addf %64, %73 : vector<1x4xf32>
      %75 = vector.extract_strided_slice %42 {offsets = [6, 0], sizes = [2, 1], strides = [1, 1]} : vector<12x1xf32> to vector<2x1xf32>
      %76 = vector.shape_cast %75 : vector<2x1xf32> to vector<1x2x1xf32>
      %cst_23 = arith.constant dense<0.000000e+00> : vector<1xf32>
      %77 = vector.multi_reduction <add>, %76, %cst_23 [1, 2] : vector<1x2x1xf32> to vector<1xf32>
      %78 = vector.shape_cast %77 : vector<1xf32> to vector<1x1x1xf32>
      %79 = vector.extract %78[0, 0, 0] : f32 from vector<1x1x1xf32>
      %cst_24 = arith.constant 0.166666672 : f32
      %80 = arith.mulf %79, %cst_24 : f32
      %81 = vector.extract_strided_slice %43 {offsets = [3, 0], sizes = [1, 4], strides = [1, 1]} : vector<6x4xf32> to vector<1x4xf32>
      %82 = vector.broadcast %80 : f32 to vector<1x4xf32>
      %83 = arith.mulf %82, %81 : vector<1x4xf32>
      %84 = arith.addf %74, %83 : vector<1x4xf32>
      %85 = vector.extract_strided_slice %42 {offsets = [8, 0], sizes = [2, 1], strides = [1, 1]} : vector<12x1xf32> to vector<2x1xf32>
      %86 = vector.shape_cast %85 : vector<2x1xf32> to vector<1x2x1xf32>
      %cst_25 = arith.constant dense<0.000000e+00> : vector<1xf32>
      %87 = vector.multi_reduction <add>, %86, %cst_25 [1, 2] : vector<1x2x1xf32> to vector<1xf32>
      %88 = vector.shape_cast %87 : vector<1xf32> to vector<1x1x1xf32>
      %89 = vector.extract %88[0, 0, 0] : f32 from vector<1x1x1xf32>
      %cst_26 = arith.constant 0.166666672 : f32
      %90 = arith.mulf %89, %cst_26 : f32
      %91 = vector.extract_strided_slice %43 {offsets = [4, 0], sizes = [1, 4], strides = [1, 1]} : vector<6x4xf32> to vector<1x4xf32>
      %92 = vector.broadcast %90 : f32 to vector<1x4xf32>
      %93 = arith.mulf %92, %91 : vector<1x4xf32>
      %94 = arith.addf %84, %93 : vector<1x4xf32>
      %95 = vector.extract_strided_slice %42 {offsets = [10, 0], sizes = [2, 1], strides = [1, 1]} : vector<12x1xf32> to vector<2x1xf32>
      %96 = vector.shape_cast %95 : vector<2x1xf32> to vector<1x2x1xf32>
      %cst_27 = arith.constant dense<0.000000e+00> : vector<1xf32>
      %97 = vector.multi_reduction <add>, %96, %cst_27 [1, 2] : vector<1x2x1xf32> to vector<1xf32>
      %98 = vector.shape_cast %97 : vector<1xf32> to vector<1x1x1xf32>
      %99 = vector.extract %98[0, 0, 0] : f32 from vector<1x1x1xf32>
      %cst_28 = arith.constant 0.166666672 : f32
      %100 = arith.mulf %99, %cst_28 : f32
      %101 = vector.extract_strided_slice %43 {offsets = [5, 0], sizes = [1, 4], strides = [1, 1]} : vector<6x4xf32> to vector<1x4xf32>
      %102 = vector.broadcast %100 : f32 to vector<1x4xf32>
      %103 = arith.mulf %102, %101 : vector<1x4xf32>
      %104 = arith.addf %94, %103 : vector<1x4xf32>
      %c0_29 = arith.constant 0 : index
      %c0_30 = arith.constant 0 : index
      %105 = vector.load %arg4[%c0_29, %c0_30] : memref<1x4xf32, #tpu.memory_space<vmem>>, vector<1x4xf32>
      tpu.vector_store %arg4[%c0_29, %c0_30], %104 {strides = array<i32>} : memref<1x4xf32, #tpu.memory_space<vmem>>, vector<1x4xf32>,
    } else {
    }
    return
  }
  func.func @transform_0(%arg0: i32) -> (i32, i32) {
    %c0_i32 = arith.constant 0 : i32
    %c0_i32_0 = arith.constant 0 : i32
    return %c0_i32, %arg0 : i32, i32
  }
  func.func @transform_1(%arg0: i32) -> (i32, i32) {
    %c0_i32 = arith.constant 0 : i32
    %c0_i32_0 = arith.constant 0 : i32
    return %arg0, %c0_i32 : i32, i32
  }
  func.func @transform_2(%arg0: i32) -> (i32, i32) {
    %c0_i32 = arith.constant 0 : i32
    %c0_i32_0 = arith.constant 0 : i32
    %c0_i32_1 = arith.constant 0 : i32
    return %c0_i32, %c0_i32_0 : i32, i32
  }
  func.func @transform_3(%arg0: i32) -> (i32, i32) {
    %c0_i32 = arith.constant 0 : i32
    %c0_i32_0 = arith.constant 0 : i32
    %c0_i32_1 = arith.constant 0 : i32
    return %c0_i32, %c0_i32_0 : i32, i32
  }
}

</mosaic_0001>

<bundles_post_ra>
// kernel: ddkd_forward.1
= control target key start
LH: loop header
LB: loop body
LE: loop exit
PB: predicated region body
PF: predicated region fallthrough
CT: control target
= control target key end

     0   :  { %s1365_s0 = inlined_call_operand.vmem [shape: bf16[18,768], index: 0, kind: input, shape index: {}]   ;;  %s1366_s1 = inlined_call_operand.vmem [shape: bf16[768,128], index: 1, kind: input, shape index: {}]   ;;  %s1367_s2 = inlined_call_operand.vmem [shape: f32[6,4], index: 2, kind: input, shape index: {}]   ;;  %s1368_s3 = inlined_call_operand.hbm [shape: f32[1,4], index: 3, kind: output, shape index: {}]  }
   0x1   :  { %v1038_v0 = vld [vmem:[%s1366_s1 + $0x38] sm:$0xff]  ;;  %v1037_v4 = vld [vmem:[%s1366_s1 + $0x30] sm:$0xff]  ;;  %v1036_v8 = vld [vmem:[%s1366_s1 + $0x28] sm:$0xff] }
   0x2   :  { %v1046_v1 = vld [vmem:[%s1366_s1 + $0x78] sm:$0xff]  ;;  %459 = vmatpush.bf16.msra.mxu0 %v1038_v0  ;;  %v1045_v5 = vld [vmem:[%s1366_s1 + $0x70] sm:$0xff]  ;;  %v1044_v9 = vld [vmem:[%s1366_s1 + $0x68] sm:$0xff] }
   0x3   :  { %v1054_v2 = vld [vmem:[%s1366_s1 + $0xb8] sm:$0xff]  ;;  %477 = vmatpush.bf16.msra.mxu1 %v1046_v1  ;;  %v1053_v6 = vld [vmem:[%s1366_s1 + $0xb0] sm:$0xff]  ;;  %v1052_v10 = vld [vmem:[%s1366_s1 + $0xa8] sm:$0xff] }
   0x4   :  { %v1062_v3 = vld [vmem:[%s1366_s1 + $0xf8] sm:$0xff]  ;;  %495 = vmatpush.bf16.msra.mxu2 %v1054_v2  ;;  %v1061_v7 = vld [vmem:[%s1366_s1 + $0xf0] sm:$0xff]  ;;  %v1060_v11 = vld [vmem:[%s1366_s1 + $0xe8] sm:$0xff] }
   0x5   :  { %513 = vmatpush.bf16.msra.mxu3 %v1062_v3  ;;  %v1035_v12 = vld [vmem:[%s1366_s1 + $0x20] sm:$0xff]  ;;  %v1034_v16 = vld [vmem:[%s1366_s1 + $0x18] sm:$0xff] }
   0x6   :  { %460 = vmatpush.bf16.msra.mxu0 %v1037_v4  ;;  %v1043_v13 = vld [vmem:[%s1366_s1 + $0x60] sm:$0xff]  ;;  %v1042_v17 = vld [vmem:[%s1366_s1 + $0x58] sm:$0xff] }
   0x7   :  { %478 = vmatpush.bf16.msra.mxu1 %v1045_v5  ;;  %v1051_v14 = vld [vmem:[%s1366_s1 + $0xa0] sm:$0xff]  ;;  %v1050_v18 = vld [vmem:[%s1366_s1 + $0x98] sm:$0xff] }
   0x8   :  { %496 = vmatpush.bf16.msra.mxu2 %v1053_v6  ;;  %v1059_v15 = vld [vmem:[%s1366_s1 + $0xe0] sm:$0xff]  ;;  %v1058_v19 = vld [vmem:[%s1366_s1 + $0xd8] sm:$0xff] }
   0x9   :  { %514 = vmatpush.bf16.msra.mxu3 %v1061_v7 }
   0xa   :  { %461 = vmatpush.bf16.msra.mxu0 %v1036_v8 }
   0xb   :  { %479 = vmatpush.bf16.msra.mxu1 %v1044_v9 }
   0xc   :  { %497 = vmatpush.bf16.msra.mxu2 %v1052_v10 }
   0xd   :  { %515 = vmatpush.bf16.msra.mxu3 %v1060_v11 }
   0xe   :  { %462 = vmatpush.bf16.msra.mxu0 %v1035_v12 }
   0xf   :  { %480 = vmatpush.bf16.msra.mxu1 %v1043_v13 }
  0x10   :  { %498 = vmatpush.bf16.msra.mxu2 %v1051_v14 }
  0x11   :  { %516 = vmatpush.bf16.msra.mxu3 %v1059_v15 }
  0x12   :  { %8 = vsyncpa [#allocation4], 0  ;;  %463 = vmatpush.bf16.msra.mxu0 %v1034_v16  ;;  %v1033_v20 = vld [vmem:[%s1366_s1 + $0x10] sm:$0xff]  ;;  %v1032_v24 = vld [vmem:[%s1366_s1 + $0x8] sm:$0xff]  ;;  %vm600_vm0 = vcmask 1041408   ;;  %vm653_vm4 = vcmask 1043456  }
  0x13   :  { %481 = vmatpush.bf16.msra.mxu1 %v1042_v17  ;;  %v1041_v21 = vld [vmem:[%s1366_s1 + $0x50] sm:$0xff]  ;;  %v1040_v25 = vld [vmem:[%s1366_s1 + $0x48] sm:$0xff]  ;;  %v1031_v28 = vld [vmem:[%s1366_s1] sm:$0xff]  ;;  %vm655_vm5 = vcmask 1045504   ;;  %vm668_vm6 = vcmask 1047558   ;;  %vm684_vm10 = vcmask 1024  }
  0x14   :  { %499 = vmatpush.bf16.msra.mxu2 %v1050_v18  ;;  %v1049_v22 = vld [vmem:[%s1366_s1 + $0x90] sm:$0xff]  ;;  %v1048_v26 = vld [vmem:[%s1366_s1 + $0x88] sm:$0xff]  ;;  %v1039_v29 = vld [vmem:[%s1366_s1 + $0x40] sm:$0xff]  ;;  %s800_s18 = sshll.u32 %s1368_s3, 4  ;;  %vm791_vm14 = vcmask 24576   ;;  %s801_s18 = int_to_ptr.hbm [resolvable:$true] %s800_s18 }
  0x15   :  { %517 = vmatpush.bf16.msra.mxu3 %v1058_v19  ;;  %v1057_v23 = vld [vmem:[%s1366_s1 + $0xd0] sm:$0xff]  ;;  %v1056_v27 = vld [vmem:[%s1366_s1 + $0xc8] sm:$0xff]  ;;  %v1047_v30 = vld [vmem:[%s1366_s1 + $0x80] sm:$0xff] }
  0x16   :  { %464 = vmatpush.bf16.msra.mxu0 %v1033_v20  ;;  %v811_v31 = vld [vmem:[%s1365_s0] sm:$0xf]  ;;  %v1028_v32 = vld [vmem:[%s1365_s0 + $0x14] sm:$0xf0]  ;;  %v1025_v33 = vld [vmem:[%s1365_s0 + $0x4] sm:$0xf] }
  0x17   :  { %482 = vmatpush.bf16.msra.mxu1 %v1041_v21  ;;  %v813_v34 = vld [vmem:[%s1365_s0 + $0x18] sm:$0xf0]  ;;  %v1055_v35 = vld [vmem:[%s1366_s1 + $0xc0] sm:$0xff]  ;;  %v819_v36 = vld [vmem:[%s1365_s0 + $0x8] sm:$0xf]  ;;  %v812_v41 = vor.u32 %v1028_v32, %v811_v31 }
  0x18   :  { %500 = vmatpush.bf16.msra.mxu2 %v1049_v22  ;;  %v1029_v37 = vld [vmem:[%s1365_s0 + $0x1c] sm:$0xf0]  ;;  %v1070_v38 = vld [vmem:[%s1366_s1 + $0x138] sm:$0xff]  ;;  %v1026_v39 = vld [vmem:[%s1365_s0 + $0xc] sm:$0xf]  ;;  %v816_v42 = vor.u32 %v1025_v33, %v813_v34 }
  0x19   :  { %518 = vmatpush.bf16.msra.mxu3 %v1057_v23  ;;  %v821_v40 = vld [vmem:[%s1365_s0 + $0x20] sm:$0xf0]  ;;  %v820_v43 = vor.u32 %v1029_v37, %v819_v36  ;;  %v1078_v44 = vld [vmem:[%s1366_s1 + $0x178] sm:$0xff]  ;;  %v1069_v46 = vld [vmem:[%s1366_s1 + $0x130] sm:$0xff] }
  0x1a   :  { %465 = vmatpush.bf16.msra.mxu0 %v1032_v24  ;;  %v824_v45 = vor.u32 %v1026_v39, %v821_v40  ;;  %v1077_v47 = vld [vmem:[%s1366_s1 + $0x170] sm:$0xff]  ;;  %v1068_v48 = vld [vmem:[%s1366_s1 + $0x128] sm:$0xff]  ;;  %v22_v51 = vld [vmem:[%s1365_s0 + $0x38] sm:$0x11] }
  0x1b   :  { %483 = vmatpush.bf16.msra.mxu1 %v1040_v25  ;;  %v1076_v49 = vld [vmem:[%s1366_s1 + $0x168] sm:$0xff]  ;;  %v21_v50 = vld [vmem:[%s1365_s0 + $0x30] sm:$0x11]  ;;  %v1067_v52 = vld [vmem:[%s1366_s1 + $0x120] sm:$0xff]  ;;  %v143_v56 = vunpack.c.l.b16 %v22_v51  ;;  %v144_v57 = vunpack.c.h.b16 %v22_v51 }
  0x1c   :  { %501 = vmatpush.bf16.msra.mxu2 %v1048_v26  ;;  %v141_v53 = vunpack.c.l.b16 %v21_v50  ;;  %v142_v54 = vunpack.c.h.b16 %v21_v50  ;;  %v1075_v55 = vld [vmem:[%s1366_s1 + $0x160] sm:$0xff]  ;;  %v1066_v58 = vld [vmem:[%s1366_s1 + $0x118] sm:$0xff]  ;;  %v1065_v0 = vld [vmem:[%s1366_s1 + $0x110] sm:$0xff] }
  0x1d   :  { %519 = vmatpush.bf16.msra.mxu3 %v1056_v27  ;;  %v155_v61 = vpack.c.b16 %v143_v56, %v143_v56  ;;  %v1074_v62 = vld [vmem:[%s1366_s1 + $0x158] sm:$0xff]  ;;  %v156_v63 = vpack.c.b16 %v144_v57, %v144_v57  ;;  %v1073_v1 = vld [vmem:[%s1366_s1 + $0x150] sm:$0xff]  ;;  %v1064_v2 = vld [vmem:[%s1366_s1 + $0x108] sm:$0xff] }
  0x1e   :  { %466 = vmatpush.bf16.msra.mxu0 %v1031_v28  ;;  %v153_v59 = vpack.c.b16 %v141_v53, %v141_v53  ;;  %v154_v60 = vpack.c.b16 %v142_v54, %v142_v54  ;;  %v1072_v3 = vld [vmem:[%s1366_s1 + $0x148] sm:$0xff]  ;;  %v23_v4 = vld [vmem:[%s1365_s0 + $0x40] sm:$0x11]  ;;  %v827_v7 = vld [vmem:[%s1365_s0 + $0x10] sm:$0xf] }
  0x1f   :  { %484 = vmatpush.bf16.msra.mxu1 %v1039_v29  ;;  %v1063_v5 = vld [vmem:[%s1366_s1 + $0x100] sm:$0xff]  ;;  %v1030_v8 = vld [vmem:[%s1365_s0 + $0x24] sm:$0xf0]  ;;  %v145_v9 = vunpack.c.l.b16 %v23_v4  ;;  %v1027_v10 = vld [vmem:[%s1365_s0 + $0x14] sm:$0xf]  ;;  %v146_v12 = vunpack.c.h.b16 %v23_v4 }
  0x20   :  { %502 = vmatpush.bf16.msra.mxu2 %v1047_v30  ;;  %v1071_v6 = vld [vmem:[%s1366_s1 + $0x140] sm:$0xff]  ;;  %v829_v11 = vld [vmem:[%s1365_s0 + $0x28] sm:$0xf0]  ;;  %v828_v13 = vor.u32 %v1030_v8, %v827_v7 }
  0x21   :  { %520 = vmatpush.bf16.msra.mxu3 %v1055_v35  ;;  %467 = vmatmul.bf16.vlgmr.msra.gmra.mxu0 %v812_v41  ;;  %v832_v14 = vor.u32 %v1027_v10, %v829_v11  ;;  %v157_v15 = vpack.c.b16 %v145_v9, %v145_v9  ;;  %v158_v16 = vpack.c.b16 %v146_v12, %v146_v12 }
  0x22   :  { %531 = vmatpush.bf16.msrb.mxu0 %v1070_v38  ;;  %485 = vmatmul.bf16.vlgmr.msra.gmra.mxu1 %v816_v42 }
  0x23   :  { %503 = vmatmul.bf16.vlgmr.msra.gmra.mxu2 %v820_v43  ;;  %549 = vmatpush.bf16.msrb.mxu1 %v1078_v44 }
  0x24   :  { %1079 = vmatpush.bf16.msrb.mxu2 %v1070_v38  ;;  %521 = vmatmul.bf16.vlgmr.msra.gmra.mxu3 %v824_v45 }
  0x25   :  { %1087 = vmatpush.bf16.msrb.mxu3 %v1078_v44 }
  0x26   :  { %532 = vmatpush.bf16.msrb.mxu0 %v1069_v46 }
  0x27   :  { %550 = vmatpush.bf16.msrb.mxu1 %v1077_v47 }
  0x28   :  { %1080 = vmatpush.bf16.msrb.mxu2 %v1069_v46 }
  0x29   :  { %1088 = vmatpush.bf16.msrb.mxu3 %v1077_v47 }
  0x2a   :  { %533 = vmatpush.bf16.msrb.mxu0 %v1068_v48 }
  0x2b   :  { %551 = vmatpush.bf16.msrb.mxu1 %v1076_v49 }
  0x2c   :  { %1081 = vmatpush.bf16.msrb.mxu2 %v1068_v48 }
  0x2d   :  { %1089 = vmatpush.bf16.msrb.mxu3 %v1076_v49 }
  0x2e   :  { %534 = vmatpush.bf16.msrb.mxu0 %v1067_v52 }
  0x2f   :  { %552 = vmatpush.bf16.msrb.mxu1 %v1075_v55 }
  0x30   :  { %1082 = vmatpush.bf16.msrb.mxu2 %v1067_v52 }
  0x31   :  { %1090 = vmatpush.bf16.msrb.mxu3 %v1075_v55  ;;  %472 = vmatmul.bf16.gmra.mxu0 %v153_v59 }
  0x32   :  { %535 = vmatpush.bf16.msrb.mxu0 %v1066_v58  ;;  %490 = vmatmul.bf16.gmra.mxu1 %v154_v60 }
  0x33   :  { %508 = vmatmul.bf16.gmra.mxu2 %v155_v61  ;;  %553 = vmatpush.bf16.msrb.mxu1 %v1074_v62 }
  0x34   :  { %1083 = vmatpush.bf16.msrb.mxu2 %v1066_v58  ;;  %526 = vmatmul.bf16.gmra.mxu3 %v156_v63 }
  0x35   :  { %1091 = vmatpush.bf16.msrb.mxu3 %v1074_v62 }
  0x36   :  { %536 = vmatpush.bf16.msrb.mxu0 %v1065_v0 }
  0x37   :  { %554 = vmatpush.bf16.msrb.mxu1 %v1073_v1 }
  0x38   :  { %1084 = vmatpush.bf16.msrb.mxu2 %v1065_v0 }
  0x39   :  { %1092 = vmatpush.bf16.msrb.mxu3 %v1073_v1 }
  0x3a   :  { %537 = vmatpush.bf16.msrb.mxu0 %v1064_v2 }
  0x3b   :  { %555 = vmatpush.bf16.msrb.mxu1 %v1072_v3 }
  0x3c   :  { %1085 = vmatpush.bf16.msrb.mxu2 %v1064_v2 }
  0x3d   :  { %1093 = vmatpush.bf16.msrb.mxu3 %v1072_v3 }
  0x3e   :  { %538 = vmatpush.bf16.msrb.mxu0 %v1063_v5 }
  0x3f   :  { %556 = vmatpush.bf16.msrb.mxu1 %v1071_v6 }
  0x40   :  { %1086 = vmatpush.bf16.msrb.mxu2 %v1063_v5 }
  0x41   :  { %1094 = vmatpush.bf16.msrb.mxu3 %v1071_v6  ;;  %539 = vmatmul.bf16.vlgmr.msrb.gmra.mxu0 %v828_v13 }
  0x42   :  { %557 = vmatmul.bf16.vlgmr.msrb.gmra.mxu1 %v832_v14 }
  0x43   :  { %544 = vmatmul.bf16.vlgmr.msrb.gmra.mxu2 %v157_v15 }
  0x44   :  { %562 = vmatmul.bf16.vlgmr.msrb.gmra.mxu3 %v158_v16 }
  0x9e   :  { %v468_v17 = vpop.f32.mrf.mxu0 }
  0x9f   :  { %v486_v18 = vpop.f32.mrf.mxu1 }
  0xa0   :  { %v487_v30 = vadd.f32 %v486_v18, %v468_v17 }
  0xa6   :  { %v504_v19 = vpop.f32.mrf.mxu2  ;;  %v470_v20 = vpop.f32.mrf.mxu0 }
  0xa7   :  { %v488_v21 = vpop.f32.mrf.mxu1  ;;  %v522_v22 = vpop.f32.mrf.mxu3  ;;  %v505_v32 = vadd.f32 %v504_v19, %v487_v30 }
  0xa8   :  { %v489_v38 = vadd.f32 %v488_v21, %v470_v20 }
  0xa9   :  { %v523_v33 = vadd.f32 %v522_v22, %v505_v32 }
  0xae   :  { %v506_v23 = vpop.f32.mrf.mxu2  ;;  %v473_v24 = vpop.f32.mrf.mxu0 }
  0xaf   :  { %v491_v25 = vpop.f32.mrf.mxu1  ;;  %v524_v26 = vpop.f32.mrf.mxu3  ;;  %v507_v42 = vadd.f32 %v506_v23, %v489_v38 }
  0xb0   :  { %v492_v35 = vadd.f32 %v491_v25, %v473_v24 }
  0xb1   :  { %v525_v46 = vadd.f32 %v524_v26, %v507_v42 }
  0xb6   :  { %v509_v27 = vpop.f32.mrf.mxu2  ;;  %v475_v28 = vpop.f32.mrf.mxu0 }
  0xb7   :  { %v493_v29 = vpop.f32.mrf.mxu1  ;;  %v527_v31 = vpop.f32.mrf.mxu3  ;;  %v510_v41 = vadd.f32 %v509_v27, %v492_v35 }
  0xb9   :  { %v528_v45 = vadd.f32 %v527_v31, %v510_v41 }
  0xbe   :  { %v511_v34 = vpop.f32.mrf.mxu2  ;;  %v540_v36 = vpop.f32.mrf.mxu0 }
  0xbf   :  { %v558_v37 = vpop.f32.mrf.mxu1  ;;  %v529_v39 = vpop.f32.mrf.mxu3  ;;  %v541_v40 = vadd.f32 %v540_v36, %v523_v33 }
  0xc1   :  { %v559_v43 = vadd.f32 %v558_v37, %v541_v40 }
  0xc3   :  { %v593_v44 = vmul.f32 %v559_v43, %v559_v43 }
  0xc5   :  { %596 = vadd.xlane.f32.xlu0 %v593_v44 }
  0xc6   :  { %v545_v47 = vpop.f32.mrf.mxu2  ;;  %v542_v49 = vpop.f32.mrf.mxu0 }
  0xc7   :  { %v546_v48 = vadd.f32 %v545_v47, %v528_v45  ;;  %v543_v50 = vadd.f32 %v542_v49, %v525_v46  ;;  %v563_v51 = vpop.f32.mrf.mxu3  ;;  %v560_v52 = vpop.f32.mrf.mxu1 }
  0xc9   :  { %v564_v53 = vadd.f32 %v563_v51, %v546_v48  ;;  %v561_v54 = vadd.f32 %v560_v52, %v543_v50 }
  0xcb   :  { %573 = vst [vmem:[#allocation2 + $0x8] sm:$0x3] %v564_v53  ;;  %v594_v55 = vmul.f32 %v561_v54, %v561_v54 }
  0xcd   :  { %598 = vadd.xlane.f32.xlu0 %v594_v55 }
  0xce   :  { %v547_v56 = vpop.f32.mrf.mxu2 }
  0xcf   :  { %v565_v57 = vpop.f32.mrf.mxu3 }
  0xd2   :  { %v592_v58 = vld [vmem:[#allocation2 + $0x8] sm:$0x3] }
  0xd3   :  { %v595_v59 = vmul.f32 %v592_v58, %v592_v58 }
  0xd5   :  { %v601_v60 = vsel %vm600_vm0, %v595_v59, 0.0 }
  0xd6   :  { %602 = vadd.xlane.f32.xlu1 %v601_v60 }
 0x138   :  { %v597_v61 = vpop.xlane.xlu0 %596 }
 0x139   :  { %v604_v62 = vmax.f32 %v597_v61, 1e-16 }
 0x13b   :  { %1108 = vrsqrt.f32 %v604_v62  ;;  %vm613_vm2 = vweird.f32 %v604_v62 }
 0x140   :  { %v599_v25 = vpop.xlane.xlu0 %598 }
 0x141   :  { %v1109_v63 = vpop.eup %1108  ;;  %v605_v26 = vmax.f32 %v599_v25, 1e-16 }
 0x142   :  { %v608_v0 = vmul.f32 %v1109_v63, %v604_v62  ;;  %vm614_vm1 = vweird.f32 %v1109_v63 }
 0x143   :  { %vm615_vm3 = vmor %vm613_vm2, %vm614_vm1  ;;  %1110 = vrsqrt.f32 %v605_v26  ;;  %vm623_vm8 = vweird.f32 %v605_v26 }
 0x144   :  { %v609_v1 = vmul.f32 %v1109_v63, %v608_v0 }
 0x146   :  { %v610_v2 = vmul.f32 0.5, %v609_v1 }
 0x148   :  { %v611_v3 = vsub.f32 1.5, %v610_v2 }
 0x149   :  { %v603_v27 = vpop.xlane.xlu1 %602  ;;  %v1111_v29 = vpop.eup %1110 }
 0x14a   :  { %v612_v4 = vmul.f32 %v1109_v63, %v611_v3  ;;  %v606_v28 = vmax.f32 %v603_v27, 1e-16  ;;  %v618_v30 = vmul.f32 %v1111_v29, %v605_v26  ;;  %vm624_vm7 = vweird.f32 %v1111_v29 }
 0x14b   :  { %vm625_vm9 = vmor %vm623_vm8, %vm624_vm7 }
 0x14c   :  { %v616_v5 = vsel %vm615_vm3, %v1109_v63, %v612_v4  ;;  %1112 = vrsqrt.f32 %v606_v28  ;;  %v619_v31 = vmul.f32 %v1111_v29, %v618_v30  ;;  %vm633_vm12 = vweird.f32 %v606_v28 }
 0x14d   :  { %v637_v6 = vmul.f32 %v616_v5, %v559_v43 }
 0x14e   :  { %v620_v34 = vmul.f32 0.5, %v619_v31 }
 0x14f   :  { %v639_v7 = vrot.slane %v637_v6, 2  ;;  %v642_v9 = vrot.slane %v637_v6, 4 }
 0x150   :  { %v621_v36 = vsub.f32 1.5, %v620_v34 }
 0x151   :  { %v641_v8 = vadd.f32 %v639_v7, %v637_v6 }
 0x152   :  { %v1113_v32 = vpop.eup %1112  ;;  %v622_v38 = vmul.f32 %v1111_v29, %v621_v36 }
 0x153   :  { %v644_v10 = vadd.f32 %v642_v9, %v641_v8  ;;  %v628_v33 = vmul.f32 %v1113_v32, %v606_v28  ;;  %vm634_vm11 = vweird.f32 %v1113_v32 }
 0x154   :  { %v626_v41 = vsel %vm625_vm9, %v1111_v29, %v622_v38  ;;  %vm635_vm13 = vmor %vm633_vm12, %vm634_vm11 }
 0x155   :  { %v646_v11 = vrot.slane %v644_v10, 6  ;;  %v648_v12 = vrot.slane %v644_v10, 4  ;;  %v650_v13 = vrot.slane %v644_v10, 2  ;;  %v629_v35 = vmul.f32 %v1113_v32, %v628_v33 }
 0x157   :  { %v652_v14 = vsel %vm600_vm0, %v644_v10, %v646_v11  ;;  %v630_v37 = vmul.f32 0.5, %v629_v35 }
 0x158   :  { %v654_v15 = vsel %vm653_vm4, %v652_v14, %v648_v12  ;;  %v660_v18 = vrot.slane %v652_v14, 2 }
 0x159   :  { %v656_v16 = vsel %vm655_vm5, %v654_v15, %v650_v13  ;;  %v631_v42 = vsub.f32 1.5, %v630_v37  ;;  %v680_v37 = vld [vmem:[%s1367_s2] sm:$0x3f]  ;;  %s1140_s2 = smov [#allocation3]  }
 0x15a   :  { %v659_v17 = vrot.slane %v656_v16, 2  ;;  %v667_v23 = vmul.f32 %v660_v18, %v592_v58  ;;  %s798_s15 = sshll.u32 %s1140_s2, 4  ;;  %s799_s15 = int_to_ptr.vmem [resolvable:$true] %s798_s15 }
 0x15b   :  { %v632_v48 = vmul.f32 %v1113_v32, %v631_v42 }
 0x15c   :  { %v665_v19 = vmul.f32 %v659_v17, %v559_v43  ;;  %v661_v20 = vsel %vm655_vm5, %v659_v17, %v660_v18  ;;  %v674_v24 = vsel %vm600_vm0, %v667_v23, 0.0 }
 0x15d   :  { %v666_v21 = vmul.f32 %v661_v20, %v561_v54  ;;  %v636_v52 = vsel %vm635_vm13, %v1113_v32, %v632_v48 }
 0x15e   :  { %v669_v22 = vsel %vm668_vm6, %v665_v19, 0.0 }
 0x15f   :  { %670 = vadd.xlane.f32.xlu1 %v669_v22  ;;  %672 = vadd.xlane.f32.xlu2 %v666_v21 }
 0x167   :  { %675 = vadd.xlane.f32.xlu2 %v674_v24 }
 0x1d2   :  { %v671_v39 = vpop.xlane.xlu1 %670  ;;  %v673_v40 = vpop.xlane.xlu2 %672 }
 0x1d3   :  { %v677_v43 = vmul.f32 %v671_v39, %v616_v5  ;;  %v678_v44 = vmul.f32 %v673_v40, %v626_v41 }
 0x1d5   :  { %v682_v45 = vrot.slane %v677_v43, 6  ;;  %v699_v46 = vsel %vm684_vm10, %v678_v44, 0.0  ;;  %v717_v47 = vrot.slane %v678_v44, 2  ;;  %v755_v51 = vrot.slane %v678_v44, 6 }
 0x1d6   :  { %700 = vadd.xlane.f32.xlu1 %v699_v46  ;;  %v736_v55 = vrot.slane %v678_v44, 4 }
 0x1d7   :  { %v685_v49 = vsel %vm684_vm10, %v682_v45, 0.0  ;;  %v719_v50 = vsel %vm684_vm10, %v717_v47, 0.0  ;;  %v757_v56 = vsel %vm684_vm10, %v755_v51, 0.0 }
 0x1d8   :  { %686 = vadd.xlane.f32.xlu0 %v685_v49  ;;  %720 = vadd.xlane.f32.xlu2 %v719_v50  ;;  %v738_v57 = vsel %vm684_vm10, %v736_v55, 0.0 }
 0x1da   :  { %v676_v53 = vpop.xlane.xlu2 %675 }
 0x1db   :  { %v679_v54 = vmul.f32 %v676_v53, %v636_v52 }
 0x1dd   :  { %v774_v58 = vsel %vm684_vm10, %v679_v54, 0.0 }
 0x1de   :  { %758 = vadd.xlane.f32.xlu1 %v757_v56 }
 0x1e0   :  { %739 = vadd.xlane.f32.xlu0 %v738_v57  ;;  %775 = vadd.xlane.f32.xlu2 %v774_v58 }
 0x249   :  { %v701_v59 = vpop.xlane.xlu1 %700 }
 0x24a   :  { %v702_v60 = vrot.slane %v701_v59, 4 }
 0x24b   :  { %v721_v61 = vpop.xlane.xlu2 %720  ;;  %v687_v62 = vpop.xlane.xlu0 %686 }
 0x24c   :  { %v703_v63 = vadd.f32 %v702_v60, %v701_v59  ;;  %v722_v0 = vrot.slane %v721_v61, 4  ;;  %v688_v1 = vrot.slane %v687_v62, 4 }
 0x24e   :  { %v704_v2 = vrot.slane %v703_v63, 2  ;;  %v723_v3 = vadd.f32 %v722_v0, %v721_v61  ;;  %v689_v4 = vadd.f32 %v688_v1, %v687_v62 }
 0x250   :  { %v724_v5 = vrot.slane %v723_v3, 2  ;;  %v690_v6 = vrot.slane %v689_v4, 2  ;;  %v705_v7 = vadd.f32 %v704_v2, %v703_v63 }
 0x251   :  { %v759_v8 = vpop.xlane.xlu1 %758 }
 0x252   :  { %v760_v9 = vrot.slane %v759_v8, 4  ;;  %v691_v10 = vadd.f32 %v690_v6, %v689_v4  ;;  %v725_v11 = vadd.f32 %v724_v5, %v723_v3  ;;  %v706_v14 = vrot.slane %v705_v7, 1 }
 0x253   :  { %v776_v12 = vpop.xlane.xlu2 %775  ;;  %v740_v13 = vpop.xlane.xlu0 %739 }
 0x254   :  { %v761_v15 = vadd.f32 %v760_v9, %v759_v8  ;;  %v777_v16 = vrot.slane %v776_v12, 4  ;;  %v741_v17 = vrot.slane %v740_v13, 4  ;;  %v692_v18 = vrot.slane %v691_v10, 1 }
 0x255   :  { %v726_v19 = vrot.slane %v725_v11, 1  ;;  %v707_v24 = vadd.f32 %v706_v14, %v705_v7 }
 0x256   :  { %v762_v20 = vrot.slane %v761_v15, 2  ;;  %v778_v21 = vadd.f32 %v777_v16, %v776_v12  ;;  %v742_v22 = vadd.f32 %v741_v17, %v740_v13  ;;  %v693_v23 = vadd.f32 %v692_v18, %v691_v10 }
 0x257   :  { %v727_v25 = vadd.f32 %v726_v19, %v725_v11 }
 0x258   :  { %v763_v26 = vadd.f32 %v762_v20, %v761_v15  ;;  %v779_v27 = vrot.slane %v778_v21, 2  ;;  %v743_v28 = vrot.slane %v742_v22, 2  ;;  %1095 = vpush %v693_v23 }
 0x259   :  { %1097 = vpush %v707_v24 }
 0x25a   :  { %v780_v29 = vadd.f32 %v779_v27, %v778_v21  ;;  %v744_v30 = vadd.f32 %v743_v28, %v742_v22  ;;  %1099 = vpush %v727_v25  ;;  %v764_v31 = vrot.slane %v763_v26, 1 }
 0x25c   :  { %v745_v32 = vrot.slane %v744_v30, 1  ;;  %v781_v33 = vrot.slane %v780_v29, 1  ;;  %v765_v36 = vadd.f32 %v764_v31, %v763_v26 }
 0x25e   :  { %v746_v34 = vadd.f32 %v745_v32, %v744_v30  ;;  %v782_v35 = vadd.f32 %v781_v33, %v780_v29 }
 0x260   :  { %1101 = vpush %v746_v34 }
 0x261   :  { %1103 = vpush %v765_v36 }
 0x262   :  { %1105 = vpush %v782_v35 }
 0x289   :  { %s1096_s0 = spop %1095 }
 0x28a   :  { %s695_s1 = smul.f32 0.16666667, %s1096_s0  ;;  %s1098_s30 = spop %1097 }
 0x28b   :  { %s709_s6 = smul.f32 0.16666667, %s1098_s30  ;;  %s1100_s7 = spop %1099 }
 0x28c   :  { %s729_s8 = smul.f32 0.16666667, %s1100_s7  ;;  %v696_v39 = vstv %s695_s1 }
 0x28d   :  { %v710_v38 = vstv %s709_s6  ;;  %v697_v43 = vmul.f32 %v696_v39, %v680_v37 }
 0x28e   :  { %v711_v40 = vmul.f32 %v710_v38, %v680_v37  ;;  %v730_v41 = vstv %s729_s8 }
 0x28f   :  { %v731_v44 = vmul.f32 %v730_v41, %v680_v37 }
 0x290   :  { %v713_v42 = vrot.slane %v711_v40, 1 }
 0x291   :  { %s1102_s9 = spop %1101  ;;  %v733_v47 = vrot.slane %v731_v44, 2 }
 0x292   :  { %s748_s10 = smul.f32 0.16666667, %s1102_s9  ;;  %s1104_s11 = spop %1103  ;;  %v715_v45 = vadd.f32 %v713_v42, %v697_v43 }
 0x293   :  { %s767_s12 = smul.f32 0.16666667, %s1104_s11  ;;  %s1106_s13 = spop %1105 }
 0x294   :  { %v749_v46 = vstv %s748_s10  ;;  %s784_s14 = smul.f32 0.16666667, %s1106_s13  ;;  %v735_v52 = vadd.f32 %v733_v47, %v715_v45 }
 0x295   :  { %v750_v48 = vmul.f32 %v749_v46, %v680_v37  ;;  %v768_v49 = vstv %s767_s12 }
 0x296   :  { %v769_v50 = vmul.f32 %v768_v49, %v680_v37  ;;  %v785_v51 = vstv %s784_s14 }
 0x297   :  { %v752_v53 = vrot.slane %v750_v48, 3  ;;  %v786_v54 = vmul.f32 %v785_v51, %v680_v37 }
 0x298   :  { %v771_v56 = vrot.slane %v769_v50, 4 }
 0x299   :  { %v754_v55 = vadd.f32 %v752_v53, %v735_v52  ;;  %v788_v58 = vrot.slane %v786_v54, 5 }
 0x29b   :  { %v773_v57 = vadd.f32 %v771_v56, %v754_v55 }
 0x29d   :  { %v790_v59 = vadd.f32 %v788_v58, %v773_v57 }
 0x29f   :  { %792 = vst.msk [vmem:[#allocation3] sm:$0x1] %vm791_vm14, %v790_v59 }
 0x2a0   :  { %803 = dma.vmem_to_hbm [thread:$0]  %s799_s15, 16, %s801_s18, [#allocation4]  }
 0x2a1   :  { %1138 = dma.done.wait [#allocation4], 16  }
 0x2a2   :  { %1139 = vsyncadd [#allocation4], 4294967280 }
 0x2a3   :  { %808 = vsyncpa [#allocation4], 1 }

</bundles_post_ra>
